<compile_context>
chip_gen: v5e
topology: v5e:2x2
jax: 0.10.0
libtpu: 0.0.40
codegen_flags: <defaults>
</compile_context>

<pallas_src>
import functools

import jax
import jax.numpy as jnp
from jax import lax
from jax.experimental import pallas as pl
from jax.experimental.pallas import tpu as pltpu


_LANE = 128


def _round_up(x, m):
    return ((x + m - 1) // m) * m


# ----------------------------- Pallas kernel --------------------------------

def _patch_proj_kernel(x_ref, w_ref, b_ref, o_ref):
    # x_ref: (1, TL, K)  bf16   patches for one L-tile of one batch element
    # w_ref: (K, Ep)     bf16   resident projection matrix (Ep = 128-multiple)
    # b_ref: (1, Ep)     f32    resident bias
    # o_ref: (1, E, TL)  f32    output tile, lane dim TL is 128-multiple
    e = o_ref.shape[1]
    acc = jnp.dot(x_ref[0], w_ref[...],
                  preferred_element_type=jnp.float32)        # (TL, Ep) on MXU
    acc = acc + b_ref[...]                                    # VPU
    # Transpose to (Ep, TL) on the XLU (free slot vs MXU/VPU), drop the lane
    # padding of embed_dim (sublane slice, e is a multiple of 8 for E=96).
    o_ref[0] = acc.T[:e, :]


def _patch_proj_pallas(patches, w2d, bias2d, embed_dim, *, tl):
    """patches: [N, L, K] bf16, w2d: [K, Ep] bf16, bias2d: [1, Ep] f32
       -> [N, embed_dim, L] f32."""
    N, L, K = patches.shape
    Ep = w2d.shape[1]

    # Large L-tile to amortize per-step pipeline overhead; clamp for small L.
    tile_l = min(tl, _round_up(L, _LANE))
    grid = (N, pl.cdiv(L, tile_l))

    return pl.pallas_call(
        _patch_proj_kernel,
        out_shape=jax.ShapeDtypeStruct((N, embed_dim, L), jnp.float32),
        grid_spec=pltpu.PrefetchScalarGridSpec(
            num_scalar_prefetch=0,
            grid=grid,
            in_specs=[
                pl.BlockSpec((1, tile_l, K), lambda n, i: (n, i, 0)),
                pl.BlockSpec((K, Ep), lambda n, i: (0, 0)),    # resident weight
                pl.BlockSpec((1, Ep), lambda n, i: (0, 0)),    # resident bias
            ],
            out_specs=pl.BlockSpec((1, embed_dim, tile_l),
                                   lambda n, i: (n, 0, i)),
        ),
        compiler_params=pltpu.CompilerParams(
            dimension_semantics=("parallel", "parallel")),
    )(patches, w2d, bias2d)


# --------------------------- Fused forward (jitted) --------------------------

@functools.partial(jax.jit, static_argnames=("patch_size", "embed_dim", "tl"))
def _patch_embed3d_forward(x, w2d, bias2d, *, patch_size, embed_dim, tl):
    """x: [N, C, D, H, W] -> [N, embed_dim, D', H', W'] (float32)."""
    pD, pH, pW = patch_size
    N, C, D, H, W = x.shape

    # Same padding convention as the PyTorch forward (pad at the end only).
    pad_d = (-D) % pD
    pad_h = (-H) % pH
    pad_w = (-W) % pW
    if pad_d or pad_h or pad_w:
        x = jnp.pad(x, ((0, 0), (0, 0), (0, pad_d), (0, pad_h), (0, pad_w)))
    Do = (D + pad_d) // pD
    Ho = (H + pad_h) // pH
    Wo = (W + pad_w) // pW

    # bf16 data path (halves streamed bytes); MXU accumulates in f32.
    xb = x.astype(jnp.bfloat16)

    # Extract non-overlapping patches, flattened (C, pD, pH, pW)-ordered to
    # match Conv3d weight flattening.  (This transpose is the unavoidable
    # im2col data movement; it fuses with pad/astype under jit.)
    xp = xb.reshape(N, C, Do, pD, Ho, pH, Wo, pW)
    xp = xp.transpose(0, 2, 4, 6, 1, 3, 5, 7)          # N, Do, Ho, Wo, C, pD, pH, pW
    patches = xp.reshape(N, Do * Ho * Wo, C * pD * pH * pW)

    out = _patch_proj_pallas(patches, w2d, bias2d, embed_dim, tl=tl)  # (N, E, L)
    # Free reshape (splits the contiguous last dim) -> no extra HBM pass.
    return out.reshape(N, embed_dim, Do, Ho, Wo)


# ------------------------------ Module wrapper -------------------------------

class PatchEmbed3D:
    """JAX/Pallas equivalent of the PyTorch PatchEmbed3D (norm_layer=None)."""

    def __init__(self, patch_size=(2, 4, 4), in_chans=3, embed_dim=96,
                 key=None, tile_l=1024):
        self.patch_size = tuple(patch_size)
        self.in_chans = in_chans
        self.embed_dim = embed_dim
        self.tile_l = tile_l
        if key is None:
            key = jax.random.PRNGKey(0)
        kw, kb = jax.random.split(key)

        # nn.Conv3d weight shape: (embed_dim, in_chans, pD, pH, pW)
        K = in_chans * patch_size[0] * patch_size[1] * patch_size[2]
        bound = 1.0 / (K ** 0.5)  # PyTorch default uniform init bound
        self.conv_weight = jax.random.uniform(
            kw, (embed_dim, in_chans, *patch_size),
            minval=-bound, maxval=bound, dtype=jnp.float32)
        self.conv_bias = jax.random.uniform(
            kb, (embed_dim,), minval=-bound, maxval=bound, dtype=jnp.float32)

        # Precompute lane-dense (E -> 128-multiple) kernel operands once:
        #   weight (E, C, pD, pH, pW) -> (K, Ep) bf16, bias -> (1, Ep) f32.
        Ep = _round_up(embed_dim, _LANE)
        wmat = self.conv_weight.reshape(embed_dim, K).T              # (K, E)
        wmat = jnp.pad(wmat, ((0, 0), (0, Ep - embed_dim)))
        self._w2d = wmat.astype(jnp.bfloat16)
        self._bias2d = jnp.pad(self.conv_bias, (0, Ep - embed_dim)
                               ).reshape(1, Ep).astype(jnp.float32)

        # TODO(synk): norm_layer (LayerNorm over embed_dim) not implemented; default is None.
        self.norm = None

    def __call__(self, x):
        return _patch_embed3d_forward(
            x, self._w2d, self._bias2d,
            patch_size=self.patch_size,
            embed_dim=self.embed_dim,
            tl=self.tile_l)


# ----------------------------------- main ------------------------------------

if __name__ == "__main__":
    key = jax.random.PRNGKey(0)
    k_x, k_p = jax.random.split(key)

    # Small video input: N=2, C=3, D=5, H=14, W=14 (exercises the pad branches).
    x = jax.random.normal(k_x, (2, 3, 5, 14, 14), dtype=jnp.float32)

    module = PatchEmbed3D(patch_size=(2, 4, 4), in_chans=3, embed_dim=96, key=k_p)
    out = module(x)
    out = jax.block_until_ready(out)

    # Reference: lax 3-D conv with the same bf16-cast inputs / f32 accumulation.
    pD, pH, pW = module.patch_size
    _, _, D, H, W = x.shape
    x_ref = jnp.pad(x, ((0, 0), (0, 0),
                        (0, (-D) % pD),
                        (0, (-H) % pH),
                        (0, (-W) % pW)))
    ref = lax.conv_general_dilated(
        x_ref.astype(jnp.bfloat16),
        module.conv_weight.astype(jnp.bfloat16),
        window_strides=module.patch_size, padding="VALID",
        dimension_numbers=("NCDHW", "OIDHW", "NCDHW"),
        preferred_element_type=jnp.float32)
    ref = ref + module.conv_bias.reshape(1, -1, 1, 1, 1)

    assert out.shape == ref.shape, (out.shape, ref.shape)
    max_err = float(jnp.max(jnp.abs(out - ref)))
    assert jnp.allclose(out, ref, atol=2e-3, rtol=2e-3), max_err

    print("KERNEL_OK")
</pallas_src>

<mosaic_0001>
module attributes {stable_mosaic.version = 11 : i64} {
  func.func @_patch_proj_kernel(%arg0: i32, %arg1: i32, %arg2: memref<1x128x96xbf16, #tpu.memory_space<vmem>>, %arg3: memref<96x128xbf16, #tpu.memory_space<vmem>>, %arg4: memref<1x128xf32, #tpu.memory_space<vmem>>, %arg5: memref<1x96x128xf32, #tpu.memory_space<vmem>>) attributes {dimension_semantics = [#tpu.dimension_semantics<parallel>, #tpu.dimension_semantics<parallel>], iteration_bounds = array<i64: 2, 1>, scalar_prefetch = 0 : i64, scratch_operands = 0 : i64, tpu.core_type = #tpu.core_type<tc>, window_params = [{transform_indices = @transform_0, window_bounds = array<i64: 1, 128, 96>}, {pipeline_mode = #tpu.pipeline_mode<synchronous>, transform_indices = @transform_1, window_bounds = array<i64: 96, 128>}, {pipeline_mode = #tpu.pipeline_mode<synchronous>, transform_indices = @transform_2, window_bounds = array<i64: 1, 128>}, {transform_indices = @transform_3, window_bounds = array<i64: 1, 96, 128>}]} {
    %c0 = arith.constant 0 : index
    %c0_0 = arith.constant 0 : index
    %c0_1 = arith.constant 0 : index
    %0 = vector.load %arg2[%c0, %c0_0, %c0_1] : memref<1x128x96xbf16, #tpu.memory_space<vmem>>, vector<1x128x96xbf16>
    %1 = vector.shape_cast %0 : vector<1x128x96xbf16> to vector<128x96xbf16>
    %c0_2 = arith.constant 0 : index
    %c0_3 = arith.constant 0 : index
    %2 = vector.load %arg3[%c0_2, %c0_3] : memref<96x128xbf16, #tpu.memory_space<vmem>>, vector<96x128xbf16>
    %cst = arith.constant dense<0.000000e+00> : vector<128x128xf32>
    %3 = tpu.matmul %1, %2, %cst {dimension_numbers = #tpu.dot_dimension_numbers<[1], [0], [0], [1], [0, 0, 1, 1], [], []>} : vector<128x96xbf16>, vector<96x128xbf16>, vector<128x128xf32> -> vector<128x128xf32>
    %c0_4 = arith.constant 0 : index
    %c0_5 = arith.constant 0 : index
    %4 = vector.load %arg4[%c0_4, %c0_5] : memref<1x128xf32, #tpu.memory_space<vmem>>, vector<1x128xf32>
    %5 = vector.broadcast %4 : vector<1x128xf32> to vector<128x128xf32>
    %6 = arith.addf %3, %5 : vector<128x128xf32>
    %7 = tpu.transpose %6, [1, 0] : vector<128x128xf32> -> vector<128x128xf32>
    %8 = vector.extract_strided_slice %7 {offsets = [0, 0], sizes = [96, 128], strides = [1, 1]} : vector<128x128xf32> to vector<96x128xf32>
    %c0_6 = arith.constant 0 : index
    %c0_7 = arith.constant 0 : index
    %c0_8 = arith.constant 0 : index
    %9 = vector.load %arg5[%c0_6, %c0_7, %c0_8] : memref<1x96x128xf32, #tpu.memory_space<vmem>>, vector<1x96x128xf32>
    %10 = vector.shape_cast %9 : vector<1x96x128xf32> to vector<96x128xf32>
    %11 = vector.shape_cast %8 : vector<96x128xf32> to vector<1x96x128xf32>
    tpu.vector_store %arg5[%c0_6, %c0_7, %c0_8], %11 {strides = array<i32>} : memref<1x96x128xf32, #tpu.memory_space<vmem>>, vector<1x96x128xf32>,
    return
  }
  func.func @transform_0(%arg0: i32, %arg1: i32) -> (i32, i32, i32) {
    %c0_i32 = arith.constant 0 : i32
    %c0_i32_0 = arith.constant 0 : i32
    return %arg0, %arg1, %c0_i32 : i32, i32, i32
  }
  func.func @transform_1(%arg0: i32, %arg1: i32) -> (i32, i32) {
    %c0_i32 = arith.constant 0 : i32
    %c0_i32_0 = arith.constant 0 : i32
    %c0_i32_1 = arith.constant 0 : i32
    return %c0_i32, %c0_i32_0 : i32, i32
  }
  func.func @transform_2(%arg0: i32, %arg1: i32) -> (i32, i32) {
    %c0_i32 = arith.constant 0 : i32
    %c0_i32_0 = arith.constant 0 : i32
    %c0_i32_1 = arith.constant 0 : i32
    return %c0_i32, %c0_i32_0 : i32, i32
  }
  func.func @transform_3(%arg0: i32, %arg1: i32) -> (i32, i32, i32) {
    %c0_i32 = arith.constant 0 : i32
    %c0_i32_0 = arith.constant 0 : i32
    return %arg0, %c0_i32, %arg1 : i32, i32, i32
  }
}

</mosaic_0001>

<bundles_post_ra>
// kernel: _patch_embed3d_forward.1
= control target key start
LH: loop header
LB: loop body
LE: loop exit
PB: predicated region body
PF: predicated region fallthrough
CT: control target
= control target key end

     0   :  { %s703_s12 = smov 0   ;;  %s705_s13 = smov 0   ;;  %s769_s0 = inlined_call_operand.vmem [shape: bf16[2,48,96], index: 0, kind: input, shape index: {}]   ;;  %s770_s1 = inlined_call_operand.vmem [shape: bf16[96,128], index: 1, kind: input, shape index: {}]   ;;  %s771_s2 = inlined_call_operand.vmem [shape: f32[1,128], index: 2, kind: input, shape index: {}]   ;;  %s772_s3 = inlined_call_operand.vmem [shape: f32[2,96,48], index: 3, kind: output, shape index: {}]  }
   0x1   :  { %s707_s14 = smov 0  }
   0x2 LB: > { %s25_s15 = sadd.s32 1, %s677_s13  ;;  %p531_p0 = scmp.ge.s32.totalorder %s681_s14, 1  ;;  %s681_s14 = sphi %s707_s14, %s13_s14   ;;  %s677_s13 = sphi %s705_s13, %s774_s13   ;;  %s673_s12 = sphi %s703_s12, %s773_s12  }
   0x3   : > { %p27_p1 = scmp.ge.s32.totalorder %s25_s15, 2  ;;  %p162_p2 = scmp.lt.s32.totalorder %s681_s14, 3 }
   0x5   : > { %s776_s15 = smov (%p27_p1, %s25_s15), 0  ;;  %p163_p3 = pnand %p531_p0, %p162_p2 }
   0x6   : > { %p198_p4 = scmp.lt.s32.totalorder (!%p163_p3), %s673_s12, 1 }
   0x7   : > { %166 = sbr.rel (%p163_p3) target bundleno = 418 (0x1a2), region = 32 }
   0xc   : > { %v613_v0 = vld [vmem:[%s770_s1 + $0x28] sm:$0xff]  ;;  %v612_v1 = vld [vmem:[%s770_s1 + $0x20] sm:$0xff]  ;;  %v611_v2 = vld [vmem:[%s770_s1 + $0x18] sm:$0xff]  ;;  %s778_s12 = smov (!%p198_p4, %s673_s12), 1  ;;  %vm326_vm0 = vcmask 785408  }
   0xd   : > { %353 = vmatpush.bf16.msra.mxu0 %v613_v0  ;;  %614 = vmatpush.bf16.msra.mxu1 %v613_v0  ;;  %v610_v3 = vld [vmem:[%s770_s1 + $0x10] sm:$0xff]  ;;  %v609_v4 = vld [vmem:[%s770_s1 + $0x8] sm:$0xff]  ;;  %s632_s26 = smul.u32 24, %s778_s12  ;;  %v608_v5 = vld [vmem:[%s770_s1] sm:$0xff] }
   0xe   : > { %615 = vmatpush.bf16.msra.mxu2 %v613_v0  ;;  %616 = vmatpush.bf16.msra.mxu3 %v613_v0  ;;  %v658_v14 = vld [vmem:[%s771_s2] ss:$0 sm:$0xff]  ;;  %s633_s7 = smul.u32 96, %s778_s12 }
   0xf   : > { %s205_s4 = scalar_lea.vmem %s769_s0, %s632_s26 }
  0x10   : > { %v600_v6 = vld [vmem:[%s205_s4] sm:$0xff]  ;;  %v602_v7 = vld [vmem:[%s205_s4 + $0x10] sm:$0xff]  ;;  %v601_v10 = vld [vmem:[%s205_s4 + $0x8] sm:$0xff]  ;;  %s216_s10 = scalar_lea.vmem %s772_s3, %s633_s7 }
  0x11   : > { %354 = vmatpush.bf16.msra.mxu0 %v612_v1  ;;  %617 = vmatpush.bf16.msra.mxu1 %v612_v1  ;;  %v604_v8 = vld [vmem:[%s205_s4 + $0x20] sm:$0xff]  ;;  %v606_v9 = vld [vmem:[%s205_s4 + $0x30] sm:$0xff]  ;;  %v603_v11 = vld [vmem:[%s205_s4 + $0x18] sm:$0xff] }
  0x12   : > { %618 = vmatpush.bf16.msra.mxu2 %v612_v1  ;;  %619 = vmatpush.bf16.msra.mxu3 %v612_v1  ;;  %v605_v12 = vld [vmem:[%s205_s4 + $0x28] sm:$0xff]  ;;  %v607_v13 = vld [vmem:[%s205_s4 + $0x38] sm:$0xff] }
  0x15   : > { %355 = vmatpush.bf16.msra.mxu0 %v611_v2  ;;  %620 = vmatpush.bf16.msra.mxu1 %v611_v2 }
  0x16   : > { %621 = vmatpush.bf16.msra.mxu2 %v611_v2  ;;  %622 = vmatpush.bf16.msra.mxu3 %v611_v2 }
  0x19   : > { %356 = vmatpush.bf16.msra.mxu0 %v610_v3  ;;  %623 = vmatpush.bf16.msra.mxu1 %v610_v3 }
  0x1a   : > { %624 = vmatpush.bf16.msra.mxu2 %v610_v3  ;;  %625 = vmatpush.bf16.msra.mxu3 %v610_v3 }
  0x1d   : > { %357 = vmatpush.bf16.msra.mxu0 %v609_v4  ;;  %626 = vmatpush.bf16.msra.mxu1 %v609_v4 }
  0x1e   : > { %627 = vmatpush.bf16.msra.mxu2 %v609_v4  ;;  %628 = vmatpush.bf16.msra.mxu3 %v609_v4 }
  0x21   : > { %358 = vmatpush.bf16.msra.mxu0 %v608_v5  ;;  %629 = vmatpush.bf16.msra.mxu1 %v608_v5 }
  0x22   : > { %630 = vmatpush.bf16.msra.mxu2 %v608_v5  ;;  %631 = vmatpush.bf16.msra.mxu3 %v608_v5 }
  0x24   : > { %590 = vmatmul.msk.bf16.vlgmr.msra.gmra.mxu0 %vm326_vm0, %v600_v6  ;;  %592 = vmatmul.msk.bf16.vlgmr.msra.gmra.mxu1 %vm326_vm0, %v602_v7 }
  0x25   : > { %594 = vmatmul.msk.bf16.vlgmr.msra.gmra.mxu2 %vm326_vm0, %v604_v8  ;;  %596 = vmatmul.msk.bf16.vlgmr.msra.gmra.mxu3 %vm326_vm0, %v606_v9 }
  0x34   : > { %591 = vmatmul.msk.bf16.gmra.mxu0 %vm326_vm0, %v601_v10  ;;  %593 = vmatmul.msk.bf16.gmra.mxu1 %vm326_vm0, %v603_v11 }
  0x35   : > { %595 = vmatmul.msk.bf16.gmra.mxu2 %vm326_vm0, %v605_v12  ;;  %597 = vmatmul.msk.bf16.gmra.mxu3 %vm326_vm0, %v607_v13 }
  0xa1   : > { %v360_v15 = vpop.f32.mrf.mxu0  ;;  %v370_v22 = vpop.f32.mrf.mxu1 }
  0xa2   : > { %v361_v16 = vadd.f32 %v658_v14, %v360_v15  ;;  %v371_v24 = vadd.f32 %v658_v14, %v370_v22 }
  0xa4   : > { %400 = vxpose.xlu0.b32.start [1/16] (narrow) %v361_v16, 96 }
  0xa8   : > { %v380_v30 = vpop.f32.mrf.mxu2  ;;  %v390_v38 = vpop.f32.mrf.mxu3 }
  0xa9   : > { %v362_v17 = vpop.f32.mrf.mxu0  ;;  %v372_v25 = vpop.f32.mrf.mxu1  ;;  %v381_v32 = vadd.f32 %v658_v14, %v380_v30  ;;  %v391_v40 = vadd.f32 %v658_v14, %v390_v38 }
  0xaa   : > { %v363_v18 = vadd.f32 %v658_v14, %v362_v17  ;;  %v373_v26 = vadd.f32 %v658_v14, %v372_v25 }
  0xac   : > { %401 = vxpose.xlu0.b32.cont [2/16] (narrow) %v363_v18, 96 }
  0xb0   : > { %v382_v33 = vpop.f32.mrf.mxu2  ;;  %v392_v41 = vpop.f32.mrf.mxu3 }
  0xb1   : > { %v365_v19 = vpop.f32.mrf.mxu0  ;;  %v375_v27 = vpop.f32.mrf.mxu1  ;;  %v383_v34 = vadd.f32 %v658_v14, %v382_v33  ;;  %v393_v42 = vadd.f32 %v658_v14, %v392_v41 }
  0xb2   : > { %v366_v20 = vadd.f32 %v658_v14, %v365_v19  ;;  %v376_v28 = vadd.f32 %v658_v14, %v375_v27 }
  0xb4   : > { %402 = vxpose.xlu0.b32.cont [3/16] (narrow) %v366_v20, 96 }
  0xb8   : > { %v385_v35 = vpop.f32.mrf.mxu2  ;;  %v395_v43 = vpop.f32.mrf.mxu3 }
  0xb9   : > { %v367_v21 = vpop.f32.mrf.mxu0  ;;  %v377_v29 = vpop.f32.mrf.mxu1  ;;  %v386_v36 = vadd.f32 %v658_v14, %v385_v35  ;;  %v396_v44 = vadd.f32 %v658_v14, %v395_v43 }
  0xba   : > { %v368_v23 = vadd.f32 %v658_v14, %v367_v21  ;;  %v378_v31 = vadd.f32 %v658_v14, %v377_v29 }
  0xbc   : > { %403 = vxpose.xlu0.b32.cont [4/16] (narrow) %v368_v23, 96 }
  0xc0   : > { %v387_v37 = vpop.f32.mrf.mxu2  ;;  %v397_v45 = vpop.f32.mrf.mxu3 }
  0xc1   : > { %v388_v39 = vadd.f32 %v658_v14, %v387_v37  ;;  %v398_v46 = vadd.f32 %v658_v14, %v397_v45 }
  0xc4   : > { %404 = vxpose.xlu0.b32.cont [5/16] (narrow) %v371_v24, 96 }
  0xcc   : > { %405 = vxpose.xlu0.b32.cont [6/16] (narrow) %v373_v26, 96 }
  0xd4   : > { %406 = vxpose.xlu0.b32.cont [7/16] (narrow) %v376_v28, 96 }
  0xdc   : > { %407 = vxpose.xlu0.b32.cont [8/16] (narrow) %v378_v31, 96 }
  0xe4   : > { %408 = vxpose.xlu0.b32.cont [9/16] (narrow) %v381_v32, 96 }
  0xec   : > { %409 = vxpose.xlu0.b32.cont [10/16] (narrow) %v383_v34, 96 }
  0xf4   : > { %410 = vxpose.xlu0.b32.cont [11/16] (narrow) %v386_v36, 96 }
  0xfc   : > { %411 = vxpose.xlu0.b32.cont [12/16] (narrow) %v388_v39, 96 }
 0x104   : > { %412 = vxpose.xlu0.b32.cont [13/16] (narrow) %v391_v40, 96 }
 0x10c   : > { %413 = vxpose.xlu0.b32.cont [14/16] (narrow) %v393_v42, 96 }
 0x114   : > { %414 = vxpose.xlu0.b32.cont [15/16] (narrow) %v396_v44, 96 }
 0x11c   : > { %415 = vxpose.xlu0.b32.end [16/16] (narrow) %v398_v46, 96 }
 0x148   : > { %v416_v47 = vpop.trf.xlu0 }
 0x149   : > { %432 = vst [vmem:[%s216_s10] sm:$0xff] %v416_v47 }
 0x150   : > { %v417_v48 = vpop.trf.xlu0 }
 0x151   : > { %433 = vst [vmem:[%s216_s10 + $0x8] sm:$0xff] %v417_v48 }
 0x158   : > { %v418_v49 = vpop.trf.xlu0 }
 0x159   : > { %434 = vst [vmem:[%s216_s10 + $0x10] sm:$0xff] %v418_v49 }
 0x160   : > { %v419_v50 = vpop.trf.xlu0 }
 0x161   : > { %435 = vst [vmem:[%s216_s10 + $0x18] sm:$0xff] %v419_v50 }
 0x168   : > { %v420_v51 = vpop.trf.xlu0 }
 0x169   : > { %436 = vst [vmem:[%s216_s10 + $0x20] sm:$0xff] %v420_v51 }
 0x170   : > { %v421_v52 = vpop.trf.xlu0 }
 0x171   : > { %437 = vst [vmem:[%s216_s10 + $0x28] sm:$0xff] %v421_v52 }
 0x178   : > { %v422_v53 = vpop.trf.xlu0 }
 0x179   : > { %438 = vst [vmem:[%s216_s10 + $0x30] sm:$0xff] %v422_v53 }
 0x180   : > { %v423_v54 = vpop.trf.xlu0 }
 0x181   : > { %439 = vst [vmem:[%s216_s10 + $0x38] sm:$0xff] %v423_v54 }
 0x188   : > { %v424_v55 = vpop.trf.xlu0 }
 0x189   : > { %440 = vst [vmem:[%s216_s10 + $0x40] sm:$0xff] %v424_v55 }
 0x190   : > { %v425_v56 = vpop.trf.xlu0 }
 0x191   : > { %441 = vst [vmem:[%s216_s10 + $0x48] sm:$0xff] %v425_v56 }
 0x198   : > { %v426_v57 = vpop.trf.xlu0 }
 0x199   : > { %442 = vst [vmem:[%s216_s10 + $0x50] sm:$0xff] %v426_v57 }
 0x1a0   : > { %v427_v58 = vpop.trf.xlu0 }
 0x1a1   : > { %443 = vst [vmem:[%s216_s10 + $0x58] sm:$0xff] %v427_v58 }
 0x1a2 PF: > { %s13_s14 = sadd.s32 1, %s681_s14   ;;  %s773_s12 = smov %s677_s13 }
 0x1a3   : > { %p10_p5 = scmp.ge.s32.totalorder %s13_s14, 4   ;;  %s774_s13 = smov %s776_s15 }
 0x1a5   :  { %12 = sbr.rel (!%p10_p5) target bundleno = 2 (0x2), region = 62 }

</bundles_post_ra>
